<compile_context>
chip_gen: v6e
topology: v6e:2x2x1
jax: 0.10.0
libtpu: 0.0.40
codegen_flags: <defaults>
</compile_context>

<pallas_src>
import jax
import jax.numpy as jnp
from jax import lax
from jax.experimental import pallas as pl
from jax.experimental.pallas import tpu as pltpu


def category_fused_kernel(idx_ref, tables_ref, out_ref):
    """idx_ref: (B, n_cols) int32.
    tables_ref: (n_cols, C+2, F) f32 — rows [0, C) = folded emb @ W^T,
                row C = gamma, row C+1 = beta.
    out_ref: (B, n_cols*F) f32 (lane-dense: column c occupies lanes [c*F, (c+1)*F))."""
    B, n_cols = idx_ref.shape
    C = tables_ref.shape[1] - 2
    F = tables_ref.shape[2]

    lane_iota = lax.broadcasted_iota(jnp.int32, (B, C), 1)
    inv_b = 1.0 / B

    for c in range(n_cols):            # static unroll; n_cols is small and static
        tab = tables_ref[c]            # (C+2, F): one load per column
        table = tab[:C, :]             # (C, F) folded embedding table
        gamma = tab[C:C + 1, :]        # (1, F)
        beta = tab[C + 1:C + 2, :]     # (1, F)

        # ---- Fused embedding gather: one-hot (B,C) @ (C,F) on the MXU. ----
        # Exactly one 1.0 per row, so this is a row select (rounding, if any,
        # is far below the module's tolerance; exact-select gather is the
        # alternative for strict bit-exactness).
        onehot = (lane_iota == idx_ref[:, c:c + 1]).astype(jnp.float32)
        y = jnp.dot(onehot, table, preferred_element_type=jnp.float32)   # (B, F)

        # ---- ReLU (commutes with the row-select gather). ----
        y = jnp.maximum(y, 0.0)

        # ---- BatchNorm1d, training-mode batch stats, single pass. ----
        mean = jnp.sum(y, axis=0, keepdims=True) * inv_b                 # (1, F)
        ex2 = jnp.sum(y * y, axis=0, keepdims=True) * inv_b              # (1, F)
        var = jnp.maximum(ex2 - mean * mean, 0.0)
        inv = lax.rsqrt(var + 1e-5)                                      # EUP slot

        scale = inv * gamma
        shift = beta - mean * scale
        out_ref[:, c * F:(c + 1) * F] = (y * scale + shift).astype(out_ref.dtype)


def fold_params(emb_table, w, gamma, beta):
    """Once-per-weight-update parameter fold (NOT per forward call).

    emb_table: (C, 2F), w: (F, 2F) (PyTorch nn.Linear layout), gamma/beta: (F,).
    Returns the augmented table (C+2, F): rows [0,C) = emb_table @ W^T,
    row C = gamma, row C+1 = beta.  gather(relu(E @ W^T)) == relu(gather(E) @ W^T),
    so forward semantics are preserved exactly.
    """
    table_f = lax.dot_general(
        emb_table, w,
        dimension_numbers=(((1,), (1,)), ((), ())),
        preferred_element_type=jnp.float32)                      # (C, F)
    return jnp.concatenate(
        [table_f,
         gamma[None, :].astype(jnp.float32),
         beta[None, :].astype(jnp.float32)],
        axis=0)


def multi_category_forward(x_idx_cols, tables_aug):
    """Fused forward for n_cols Category columns in one pallas_call.

    x_idx_cols: (B, n_cols) int32 category ids (one column per Category module).
    tables_aug: (n_cols, C+2, F) f32 stacked augmented tables (from fold_params).
    Returns (B, n_cols*F) f32.
    """
    B, n_cols = x_idx_cols.shape
    F = tables_aug.shape[2]
    vmem = pl.BlockSpec(memory_space=pltpu.MemorySpace.VMEM)
    return pl.pallas_call(
        category_fused_kernel,
        out_shape=jax.ShapeDtypeStruct((B, n_cols * F), jnp.float32),
        in_specs=[vmem, vmem],
        out_specs=vmem,
    )(x_idx_cols.astype(jnp.int32), tables_aug)


def category_forward(x_idx, table_aug):
    """Single Category module: x_idx (B,) int32 -> (B, F) f32."""
    return multi_category_forward(x_idx[:, None], table_aug[None])


if __name__ == "__main__":
    num_categories = 16
    num_features = 128          # PyTorch module default
    B = 8                       # small batch
    n_cols = 4                  # number of fused Category columns in the demo

    key = jax.random.PRNGKey(0)
    ks = jax.random.split(key, n_cols + 1)

    def make_column(k):
        k_emb, k_w, k_g, k_b = jax.random.split(k, 4)
        # nn.Embedding(C, 2F): weight ~ N(0, 1)
        emb = jax.random.normal(k_emb, (num_categories, 2 * num_features), jnp.float32)
        # nn.Linear(2F, F, bias=False), PyTorch layout (F, 2F)
        bound = 1.0 / jnp.sqrt(2.0 * num_features)
        w = jax.random.uniform(k_w, (num_features, 2 * num_features),
                               minval=-bound, maxval=bound, dtype=jnp.float32)
        # BatchNorm1d affine params (non-trivial values to exercise the epilogue)
        gamma = jax.random.uniform(k_g, (num_features,), minval=0.5, maxval=1.5,
                                   dtype=jnp.float32)
        beta = 0.1 * jax.random.normal(k_b, (num_features,), jnp.float32)
        return emb, w, gamma, beta

    cols = [make_column(ks[i]) for i in range(n_cols)]
    x_idx = jax.random.randint(ks[-1], (B, n_cols), 0, num_categories, dtype=jnp.int32)

    # Parameter fold (amortized across calls; here done once).
    tables_aug = jnp.stack([fold_params(*p) for p in cols], axis=0)   # (n_cols, C+2, F)

    # Pure-JAX reference mirroring the PyTorch Category forward (training-mode BN).
    def reference(idx_col, emb, w, gamma, beta):
        y = jnp.maximum(emb[idx_col] @ w.T, 0.0)
        mu = jnp.mean(y, axis=0, keepdims=True)
        var = jnp.mean((y - mu) ** 2, axis=0, keepdims=True)          # biased variance
        return (y - mu) * lax.rsqrt(var + 1e-5) * gamma[None, :] + beta[None, :]

    # --- Single-module path (semantics of the original Category module). ---
    out_single = jax.block_until_ready(category_forward(x_idx[:, 0], tables_aug[0]))
    ref_single = reference(x_idx[:, 0], *cols[0])
    assert out_single.shape == (B, num_features)
    assert jnp.allclose(out_single, ref_single, atol=1e-3, rtol=1e-3), float(
        jnp.max(jnp.abs(out_single - ref_single)))

    # --- Fused multi-column path: one pallas_call for all n_cols columns. ---
    out_fused = jax.block_until_ready(multi_category_forward(x_idx, tables_aug))
    assert out_fused.shape == (B, n_cols * num_features)
    for c in range(n_cols):
        ref_c = reference(x_idx[:, c], *cols[c])
        got_c = out_fused[:, c * num_features:(c + 1) * num_features]
        assert jnp.allclose(got_c, ref_c, atol=1e-3, rtol=1e-3), (
            c, float(jnp.max(jnp.abs(got_c - ref_c))))

    print("KERNEL_OK")
</pallas_src>

<mosaic_0001>
module attributes {stable_mosaic.version = 11 : i64} {
  func.func @category_fused_kernel(%arg0: memref<8x1xi32, #tpu.memory_space<vmem>>, %arg1: memref<1x18x128xf32, #tpu.memory_space<vmem>>, %arg2: memref<8x128xf32, #tpu.memory_space<vmem>>) attributes {dimension_semantics = [], scalar_prefetch = 0 : i64, scratch_operands = 0 : i64, tpu.core_type = #tpu.core_type<tc>} {
    %0 = tpu.iota {dimensions = array<i32: 1>} : vector<8x16xi32>
    %c0 = arith.constant 0 : index
    %c0_0 = arith.constant 0 : index
    %c0_1 = arith.constant 0 : index
    %1 = vector.load %arg1[%c0, %c0_0, %c0_1] : memref<1x18x128xf32, #tpu.memory_space<vmem>>, vector<1x18x128xf32>
    %2 = vector.shape_cast %1 : vector<1x18x128xf32> to vector<18x128xf32>
    %3 = vector.extract_strided_slice %2 {offsets = [0, 0], sizes = [16, 128], strides = [1, 1]} : vector<18x128xf32> to vector<16x128xf32>
    %4 = vector.extract_strided_slice %2 {offsets = [16, 0], sizes = [1, 128], strides = [1, 1]} : vector<18x128xf32> to vector<1x128xf32>
    %5 = vector.extract_strided_slice %2 {offsets = [17, 0], sizes = [1, 128], strides = [1, 1]} : vector<18x128xf32> to vector<1x128xf32>
    %c0_2 = arith.constant 0 : index
    %c0_3 = arith.constant 0 : index
    %6 = vector.load %arg0[%c0_2, %c0_3] : memref<8x1xi32, #tpu.memory_space<vmem>>, vector<8x1xi32>
    %7 = vector.broadcast %6 : vector<8x1xi32> to vector<8x16xi32>
    %8 = arith.cmpi eq, %0, %7 : vector<8x16xi32>
    %9 = arith.extui %8 : vector<8x16xi1> to vector<8x16xi32>
    %10 = arith.sitofp %9 : vector<8x16xi32> to vector<8x16xf32>
    %cst = arith.constant dense<0.000000e+00> : vector<8x128xf32>
    %11 = tpu.matmul %10, %3, %cst {dimension_numbers = #tpu.dot_dimension_numbers<[1], [0], [0], [1], [0, 0, 1, 1], [], []>} : vector<8x16xf32>, vector<16x128xf32>, vector<8x128xf32> -> vector<8x128xf32>
    %cst_4 = arith.constant 0.000000e+00 : f32
    %12 = vector.broadcast %cst_4 : f32 to vector<8x128xf32>
    %13 = arith.maximumf %11, %12 : vector<8x128xf32>
    %cst_5 = arith.constant dense<0.000000e+00> : vector<128xf32>
    %14 = vector.multi_reduction <add>, %13, %cst_5 [0] : vector<8x128xf32> to vector<128xf32>
    %15 = vector.shape_cast %14 : vector<128xf32> to vector<1x128xf32>
    %cst_6 = arith.constant 1.250000e-01 : f32
    %16 = vector.broadcast %cst_6 : f32 to vector<1x128xf32>
    %17 = arith.mulf %15, %16 : vector<1x128xf32>
    %18 = arith.mulf %13, %13 : vector<8x128xf32>
    %cst_7 = arith.constant dense<0.000000e+00> : vector<128xf32>
    %19 = vector.multi_reduction <add>, %18, %cst_7 [0] : vector<8x128xf32> to vector<128xf32>
    %20 = vector.shape_cast %19 : vector<128xf32> to vector<1x128xf32>
    %cst_8 = arith.constant 1.250000e-01 : f32
    %21 = vector.broadcast %cst_8 : f32 to vector<1x128xf32>
    %22 = arith.mulf %20, %21 : vector<1x128xf32>
    %23 = arith.mulf %17, %17 : vector<1x128xf32>
    %24 = arith.subf %22, %23 : vector<1x128xf32>
    %cst_9 = arith.constant 0.000000e+00 : f32
    %25 = vector.broadcast %cst_9 : f32 to vector<1x128xf32>
    %26 = arith.maximumf %24, %25 : vector<1x128xf32>
    %cst_10 = arith.constant 9.99999974E-6 : f32
    %27 = vector.broadcast %cst_10 : f32 to vector<1x128xf32>
    %28 = arith.addf %26, %27 : vector<1x128xf32>
    %29 = math.rsqrt %28 : vector<1x128xf32>
    %30 = arith.mulf %29, %4 : vector<1x128xf32>
    %31 = arith.mulf %17, %30 : vector<1x128xf32>
    %32 = arith.subf %5, %31 : vector<1x128xf32>
    %33 = vector.broadcast %30 : vector<1x128xf32> to vector<8x128xf32>
    %34 = arith.mulf %13, %33 : vector<8x128xf32>
    %35 = vector.broadcast %32 : vector<1x128xf32> to vector<8x128xf32>
    %36 = arith.addf %34, %35 : vector<8x128xf32>
    %c0_11 = arith.constant 0 : index
    %c0_12 = arith.constant 0 : index
    %37 = vector.load %arg2[%c0_11, %c0_12] : memref<8x128xf32, #tpu.memory_space<vmem>>, vector<8x128xf32>
    tpu.vector_store %arg2[%c0_11, %c0_12], %36 {strides = array<i32>} : memref<8x128xf32, #tpu.memory_space<vmem>>, vector<8x128xf32>,
    return
  }
}

</mosaic_0001>

<bundles_post_ra>
// kernel: tpu_custom_call.1
= control target key start
LH: loop header
LB: loop body
LE: loop exit
PB: predicated region body
PF: predicated region fallthrough
CT: control target
= control target key end

     0   :  { %v191_v2 = vmov 0   ;;  %v192_v3 = vmov 0.0   ;;  %s225_s0 = inlined_call_operand.vmem [shape: s32[8,1], index: 0, kind: input, shape index: {}]   ;;  %s226_s1 = inlined_call_operand.vmem [shape: f32[1,18,128], index: 1, kind: input, shape index: {}]   ;;  %s227_s2 = inlined_call_operand.hbm [shape: f32[8,128], index: 2, kind: output, shape index: {}]  }
   0x1   :  { %v17_v0 = vld [vmem:[%s225_s0] sm:$0xff]  ;;  %v15_v1 = vld [vmem:[%s226_s1 + $0x8] sm:$0xff]  ;;  %166 = vset.pattern.permute.xlu0 %v191_v2  ;;  %155 = vmatprep.subr.mxu0 %v192_v3 }
   0x2   :  { %v14_v4 = vld [vmem:[%s226_s1] sm:$0xff] }
   0x3   :  { %7 = vsyncpa [#allocation3], 0  ;;  %19 = vperm.xlu0 %166, %v17_v0   ;;  %156 = vmatpush3.msra.mxu0 %v15_v1  ;;  %vm193_vm0 = vmmov 0   ;;  %v12_v5 = vlaneseq  ;;  %vm24_vm1 = vcmask 130048   ;;  %v16_v32 = vld [vmem:[%s226_s1 + $0x10] sm:$0x3] }
   0x4   :  { %157 = vmatprep.subr.mxu0 %v192_v3  ;;  %159 = vmatprep.mubr.msk.f32.mxu0 %vm193_vm0, %v192_v3  ;;  %s194_s16 = smov [#allocation2]  }
   0x5   :  { %158 = vmatpush3.msra.mxu0 %v14_v4  ;;  %v13_v6 = vand.u32 127, %v12_v5  ;;  %v126_v31 = vshrl.u32 %v12_v5, 7  ;;  %s142_s17 = sshll.u32 %s194_s16, 4  ;;  %s143_s17 = int_to_ptr.vmem [resolvable:$true] %s142_s17 }
   0x6   :  { %s169_s18 = scalar_lea.vmem %s143_s17, 128  ;;  %p174_p1 = scmp.lt.s32.totalorder %s143_s17, %s143_s17 }
   0x7   :  { %v127_v35 = vsub.s32 0, %v126_v31  ;;  %v132_v39 = vsub.s32 1, %v126_v31  ;;  %p170_p0 = scmp.ne.s32.totalorder %s143_s17, %s169_s18  ;;  %p175_p2 = scmp.lt.s32.totalorder %s169_s18, %s169_s18 }
   0x9   :  { %p176_p3 = por %p175_p2, %p174_p1 }
   0xb   :  { %p177_p4 = pnand %p176_p3, %p170_p0 }
  0x7e   :  { %v20_v7 = vpop.permute.xlu0 %19 }
  0x7f   :  { %vm21_vm2 = vcmp.eq.s32.totalorder %v13_v6, %v20_v7 }
  0x80   :  { %v150_v8 = vsel %vm21_vm2, 1.0, %v192_v3 }
  0x81   :  { %160 = vmatmul.mubr.msk.f32.vlgmr.msra.gmra.mxu0 %vm24_vm1, %v150_v8 }
 0x141   :  { %v94_v9 = vpop.f32.mrf.mxu0 }
 0x142   :  { %v98_v10 = vmax.f32 %v94_v9, 0.0 }
 0x143   :  { %v161_v11 = vpop.f32.mrf.mxu0 }
 0x144   :  { %v99_v12 = vrot.slane %v98_v10, 4  ;;  %v106_v13 = vmul.f32 %v98_v10, %v98_v10 }
 0x146   :  { %v100_v14 = vadd.f32 %v99_v12, %v98_v10  ;;  %v107_v15 = vrot.slane %v106_v13, 4 }
 0x148   :  { %v101_v16 = vrot.slane %v100_v14, 2  ;;  %v108_v17 = vadd.f32 %v107_v15, %v106_v13 }
 0x14a   :  { %v102_v18 = vadd.f32 %v101_v16, %v100_v14  ;;  %v109_v19 = vrot.slane %v108_v17, 2 }
 0x14c   :  { %v103_v20 = vrot.slane %v102_v18, 1  ;;  %v110_v21 = vadd.f32 %v109_v19, %v108_v17 }
 0x14e   :  { %v111_v22 = vrot.slane %v110_v21, 1  ;;  %v104_v23 = vadd.f32 %v103_v20, %v102_v18 }
 0x150   :  { %v112_v24 = vadd.f32 %v111_v22, %v110_v21  ;;  %v105_v25 = vmul.f32 0.125, %v104_v23 }
 0x152   :  { %v113_v26 = vmul.f32 0.125, %v112_v24  ;;  %v114_v27 = vmul.f32 %v105_v25, %v105_v25 }
 0x154   :  { %v115_v28 = vsub.f32 %v113_v26, %v114_v27 }
 0x156   :  { %v116_v29 = vmax.f32 %v115_v28, 0.0 }
 0x158   :  { %v117_v30 = vadd.f32 1e-05, %v116_v29 }
 0x15a   :  { %167 = vrsqrt.f32 %v117_v30 }
 0x167   :  { %v168_v33 = vpop.eup %167 }
 0x168   :  { %v119_v34 = vmul.f32 %v168_v33, %v16_v32 }
 0x16a   :  { %v120_v36 = vmul.f32 %v119_v34, %v105_v25  ;;  %v128_v38 = vrot.slane %v119_v34, %v127_v35 }
 0x16c   :  { %v122_v37 = vrot.slane %v120_v36, 7  ;;  %v129_v41 = vmul.f32 %v128_v38, %v98_v10 }
 0x16e   :  { %v124_v40 = vsub.f32 %v16_v32, %v122_v37 }
 0x170   :  { %v133_v42 = vrot.slane %v124_v40, %v132_v39 }
 0x172   :  { %v134_v43 = vadd.f32 %v133_v42, %v129_v41 }
 0x174   :  { %135 = vst [vmem:[#allocation2] sm:$0xff] %v134_v43 }
 0x175   :  { %180 = shalt.err (!%p177_p4)
}
 0x176   :  { %145 = dma.vmem_to_hbm [thread:$0]  %s143_s17, 128, %s227_s2, [#allocation3]  }
 0x177   :  { %189 = dma.done.wait [#allocation3], 128  }
 0x178   :  { %190 = vsyncadd [#allocation3], 4294967168 }
 0x179   :  { %149 = vsyncpa [#allocation3], 1 }

</bundles_post_ra>
